<compile_context>
chip_gen: v6e
topology: v6e:2x2x1
jax: 0.10.0
libtpu: 0.0.40
codegen_flags: <defaults>
</compile_context>

<pallas_src>
import jax
import jax.numpy as jnp
from jax.experimental import pallas as pl
from jax.experimental.pallas import tpu as pltpu

_NEG = -1e30  # effectively -inf for padded class columns (safe in f32)


# ---------------------------------------------------------------------------
# Kernels
# ---------------------------------------------------------------------------
def _reparam_head_kernel(mu_ref, logvar_ref, eps_ref, w_ref, b_ref, o_ref):
    # mu_ref, logvar_ref : VMEM (B, L)
    # eps_ref            : VMEM (B, 1)  per-sample noise scalar
    # w_ref              : VMEM (L, Cp) Cp = classes padded to a 128 multiple
    # b_ref              : VMEM (1, Cp) padded columns hold -1e30
    # o_ref              : VMEM (B, Cp) lane-dense log-probabilities
    sigma = jnp.exp(logvar_ref[...])                 # torch.exp(logvar), no 0.5
    z = mu_ref[...] + sigma * eps_ref[...]           # (B,1) broadcasts over lanes
    logits = jnp.dot(z, w_ref[...],
                     preferred_element_type=jnp.float32) + b_ref[...]
    m = jnp.max(logits, axis=1, keepdims=True)
    shifted = logits - m
    lse = jnp.log(jnp.sum(jnp.exp(shifted), axis=1, keepdims=True))
    o_ref[...] = (shifted - lse).astype(o_ref.dtype)


def _head_kernel(x_ref, w_ref, b_ref, o_ref):
    # No-noise path (z == x): no logvar / eps inputs, no exp().
    logits = jnp.dot(x_ref[...], w_ref[...],
                     preferred_element_type=jnp.float32) + b_ref[...]
    m = jnp.max(logits, axis=1, keepdims=True)
    shifted = logits - m
    lse = jnp.log(jnp.sum(jnp.exp(shifted), axis=1, keepdims=True))
    o_ref[...] = (shifted - lse).astype(o_ref.dtype)


# ---------------------------------------------------------------------------
# Parameter setup (done once, not per call)
# ---------------------------------------------------------------------------
def prepare_head_params(w, b):
    """Pad nn.Linear params for the lane-dense kernels.

    w : [C, L] (PyTorch nn.Linear weight layout) or [L, C]; b : [C].
    Returns (w_pad [L, Cp], b_pad [1, Cp], C).
    """
    w = jnp.asarray(w, jnp.float32)
    b = jnp.asarray(b, jnp.float32)
    C = b.shape[0]
    if w.shape[0] == C and (w.ndim == 2 and w.shape[1] != C):
        w = w.T                                  # [C, L] -> [L, C]
    L = w.shape[0]
    Cp = max(128, ((C + 127) // 128) * 128)
    w_pad = jnp.zeros((L, Cp), jnp.float32).at[:, :C].set(w)
    b_pad = jnp.full((1, Cp), _NEG, jnp.float32).at[:, :C].set(b.reshape(1, C))
    return w_pad, b_pad, C


# ---------------------------------------------------------------------------
# Wrappers (gridless: whole-array VMEM blocks; shapes are tiny)
# ---------------------------------------------------------------------------
_VMEM = pl.BlockSpec(memory_space=pltpu.MemorySpace.VMEM)


def reparam_linear_logsoftmax_padded(mu, logvar, eps, w_pad, b_pad):
    """Fused reparameterize(+noise) + LINEAR_LOGSOFTMAX. Returns padded (B, Cp)."""
    B, L = mu.shape
    Cp = w_pad.shape[1]
    eps2 = jnp.asarray(eps, jnp.float32).reshape(B, 1)
    return pl.pallas_call(
        _reparam_head_kernel,
        out_shape=jax.ShapeDtypeStruct((B, Cp), jnp.float32),
        in_specs=[_VMEM, _VMEM, _VMEM, _VMEM, _VMEM],
        out_specs=_VMEM,
    )(mu.astype(jnp.float32), logvar.astype(jnp.float32), eps2, w_pad, b_pad)


def linear_logsoftmax_padded(x, w_pad, b_pad):
    """LINEAR_LOGSOFTMAX.forward alone (or reparameterize_with_noise=False).
    Returns padded (B, Cp)."""
    B, _ = x.shape
    Cp = w_pad.shape[1]
    return pl.pallas_call(
        _head_kernel,
        out_shape=jax.ShapeDtypeStruct((B, Cp), jnp.float32),
        in_specs=[_VMEM, _VMEM, _VMEM],
        out_specs=_VMEM,
    )(x.astype(jnp.float32), w_pad, b_pad)


if __name__ == "__main__":
    key = jax.random.PRNGKey(0)
    k_x, k_w, k_b, k_mu, k_lv, k_eps = jax.random.split(key, 6)

    # Shapes implied by the module: latent_size=32, AWA-like nclass=50, batch=8.
    batch = 8
    latent_size = 32
    nclass = 50

    # nn.Linear(input_dim, nclass): weight [nclass, input_dim], bias [nclass].
    bound = 1.0 / (latent_size ** 0.5)
    w_torch = jax.random.uniform(k_w, (nclass, latent_size), jnp.float32,
                                 minval=-bound, maxval=bound)
    b = jax.random.uniform(k_b, (nclass,), jnp.float32,
                           minval=-bound, maxval=bound)

    # One-time parameter setup (padding hoisted out of the per-call path).
    w_pad, b_pad, C = prepare_head_params(w_torch, b)

    mu = jax.random.normal(k_mu, (batch, latent_size), jnp.float32)
    logvar = 0.1 * jax.random.normal(k_lv, (batch, latent_size), jnp.float32)
    eps = jax.random.normal(k_eps, (batch,), jnp.float32)  # per-sample scalar

    # Fused path: z = reparameterize(mu, logvar) ; o = LINEAR_LOGSOFTMAX(z)
    o_pad = jax.block_until_ready(
        reparam_linear_logsoftmax_padded(mu, logvar, eps, w_pad, b_pad))

    # No-noise / standalone classifier head path.
    x = jax.random.normal(k_x, (batch, latent_size), jnp.float32)
    o_head_pad = jax.block_until_ready(
        linear_logsoftmax_padded(x, w_pad, b_pad))

    # Consumer-side slice (only here, for comparison against the reference).
    o = o_pad[:, :C]
    o_head = o_head_pad[:, :C]

    # Pure-JAX references (sigma = exp(logvar), eps expanded — matches PyTorch).
    w = w_torch.T
    z_ref = mu + jnp.exp(logvar) * eps[:, None]
    o_ref = jax.nn.log_softmax(z_ref @ w + b, axis=1)
    o_head_ref = jax.nn.log_softmax(x @ w + b, axis=1)

    assert o.shape == (batch, nclass)
    assert jnp.allclose(o, o_ref, atol=1e-5, rtol=1e-5), "fused mismatch"
    assert jnp.allclose(o_head, o_head_ref, atol=1e-5, rtol=1e-5), "head mismatch"

    print("KERNEL_OK")
</pallas_src>

<mosaic_0001>
module attributes {stable_mosaic.version = 11 : i64} {
  func.func @_reparam_head_kernel(%arg0: memref<8x32xf32, #tpu.memory_space<vmem>>, %arg1: memref<8x32xf32, #tpu.memory_space<vmem>>, %arg2: memref<8x1xf32, #tpu.memory_space<vmem>>, %arg3: memref<32x128xf32, #tpu.memory_space<vmem>>, %arg4: memref<1x128xf32, #tpu.memory_space<vmem>>, %arg5: memref<8x128xf32, #tpu.memory_space<vmem>>) attributes {dimension_semantics = [], scalar_prefetch = 0 : i64, scratch_operands = 0 : i64, tpu.core_type = #tpu.core_type<tc>} {
    %c0 = arith.constant 0 : index
    %c0_0 = arith.constant 0 : index
    %0 = vector.load %arg1[%c0, %c0_0] : memref<8x32xf32, #tpu.memory_space<vmem>>, vector<8x32xf32>
    %1 = math.exp %0 : vector<8x32xf32>
    %c0_1 = arith.constant 0 : index
    %c0_2 = arith.constant 0 : index
    %2 = vector.load %arg0[%c0_1, %c0_2] : memref<8x32xf32, #tpu.memory_space<vmem>>, vector<8x32xf32>
    %c0_3 = arith.constant 0 : index
    %c0_4 = arith.constant 0 : index
    %3 = vector.load %arg2[%c0_3, %c0_4] : memref<8x1xf32, #tpu.memory_space<vmem>>, vector<8x1xf32>
    %4 = vector.broadcast %3 : vector<8x1xf32> to vector<8x32xf32>
    %5 = arith.mulf %1, %4 : vector<8x32xf32>
    %6 = arith.addf %2, %5 : vector<8x32xf32>
    %c0_5 = arith.constant 0 : index
    %c0_6 = arith.constant 0 : index
    %7 = vector.load %arg3[%c0_5, %c0_6] : memref<32x128xf32, #tpu.memory_space<vmem>>, vector<32x128xf32>
    %cst = arith.constant dense<0.000000e+00> : vector<8x128xf32>
    %8 = tpu.matmul %6, %7, %cst {dimension_numbers = #tpu.dot_dimension_numbers<[1], [0], [0], [1], [0, 0, 1, 1], [], []>} : vector<8x32xf32>, vector<32x128xf32>, vector<8x128xf32> -> vector<8x128xf32>
    %c0_7 = arith.constant 0 : index
    %c0_8 = arith.constant 0 : index
    %9 = vector.load %arg4[%c0_7, %c0_8] : memref<1x128xf32, #tpu.memory_space<vmem>>, vector<1x128xf32>
    %10 = vector.broadcast %9 : vector<1x128xf32> to vector<8x128xf32>
    %11 = arith.addf %8, %10 : vector<8x128xf32>
    %cst_9 = arith.constant dense<0xFF800000> : vector<8xf32>
    %12 = vector.multi_reduction <maximumf>, %11, %cst_9 [1] : vector<8x128xf32> to vector<8xf32>
    %13 = vector.shape_cast %12 : vector<8xf32> to vector<8x1xf32>
    %14 = vector.broadcast %13 : vector<8x1xf32> to vector<8x128xf32>
    %15 = arith.subf %11, %14 : vector<8x128xf32>
    %16 = math.exp %15 : vector<8x128xf32>
    %cst_10 = arith.constant dense<0.000000e+00> : vector<8xf32>
    %17 = vector.multi_reduction <add>, %16, %cst_10 [1] : vector<8x128xf32> to vector<8xf32>
    %18 = vector.shape_cast %17 : vector<8xf32> to vector<8x1xf32>
    %19 = math.log %18 : vector<8x1xf32>
    %20 = vector.broadcast %19 : vector<8x1xf32> to vector<8x128xf32>
    %21 = arith.subf %15, %20 : vector<8x128xf32>
    %c0_11 = arith.constant 0 : index
    %c0_12 = arith.constant 0 : index
    %22 = vector.load %arg5[%c0_11, %c0_12] : memref<8x128xf32, #tpu.memory_space<vmem>>, vector<8x128xf32>
    tpu.vector_store %arg5[%c0_11, %c0_12], %21 {strides = array<i32>} : memref<8x128xf32, #tpu.memory_space<vmem>>, vector<8x128xf32>,
    return
  }
}

</mosaic_0001>

<bundles_post_ra>
// kernel: tpu_custom_call.1
= control target key start
LH: loop header
LB: loop body
LE: loop exit
PB: predicated region body
PF: predicated region fallthrough
CT: control target
= control target key end

     0   :  { %10 = vsyncpa [#allocation3], 0  ;;  %s326_s0 = inlined_call_operand.vmem [shape: f32[8,32], index: 0, kind: input, shape index: {}]   ;;  %s327_s1 = inlined_call_operand.hbm [shape: f32[8,32], index: 1, kind: input, shape index: {}]   ;;  %s328_s2 = inlined_call_operand.vmem [shape: f32[8,1], index: 2, kind: input, shape index: {}]   ;;  %s329_s3 = inlined_call_operand.hbm [shape: f32[32,128], index: 3, kind: input, shape index: {}]   ;;  %s330_s4 = inlined_call_operand.vmem [shape: f32[1,128], index: 4, kind: input, shape index: {}]   ;;  %s331_s5 = inlined_call_operand.hbm [shape: f32[8,128], index: 5, kind: output, shape index: {}]  }
   0x1   :  { %11 = vsyncpa [#allocation6], 0 }
   0x2   :  { %12 = vsyncpa [#allocation4], 0  ;;  %s270_s18 = smov [#allocation2]   ;;  %s271_s20 = smov [#allocation5]  }
   0x3   :  { %s21_s19 = sshll.u32 %s270_s18, 4  ;;  %s32_s21 = sshll.u32 %s271_s20, 4  ;;  %s22_s19 = int_to_ptr.vmem [resolvable:$true] %s21_s19  ;;  %s33_s21 = int_to_ptr.vmem [resolvable:$true] %s32_s21 }
   0x4   :  { %s212_s22 = scalar_lea.vmem %s22_s19, 128  ;;  %p217_p1 = scmp.lt.s32.totalorder %s22_s19, %s22_s19 }
   0x5   :  { %p213_p0 = scmp.ne.s32.totalorder %s22_s19, %s212_s22  ;;  %p218_p2 = scmp.lt.s32.totalorder %s212_s22, %s212_s22 }
   0x7   :  { %p219_p3 = por %p218_p2, %p217_p1 }
   0x9   :  { %p220_p4 = pnand %p219_p3, %p213_p0 }
   0xb   :  { %223 = shalt.err (!%p220_p4)
}
   0xc   :  { %24 = dma.hbm_to_vmem [thread:$0]  %s327_s1, 128, %s22_s19, [#allocation3]  }
   0xd   :  { %s232_s25 = scalar_lea.vmem %s33_s21, 512  ;;  %p237_p6 = scmp.lt.s32.totalorder %s33_s21, %s33_s21 }
   0xe   :  { %p233_p5 = scmp.ne.s32.totalorder %s33_s21, %s232_s25  ;;  %p238_p7 = scmp.lt.s32.totalorder %s232_s25, %s232_s25 }
  0x10   :  { %p239_p8 = por %p238_p7, %p237_p6 }
  0x12   :  { %p240_p9 = pnand %p239_p8, %p233_p5 }
  0x14   :  { %243 = shalt.err (!%p240_p9)
}
  0x15   :  { %s272_s26 = smov 128   ;;  %s273_s27 = smov 8  }
  0x16   :  { %38 = dma.hbm_to_vmem [thread:$0]  %s329_s3, 512, %s33_s21, [#allocation6], %s272_s26, %s272_s26, %s273_s27  }
  0x17   :  { %264 = dma.done.wait [#allocation3], 128  }
  0x18   :  { %265 = vsyncadd [#allocation3], 4294967168 }
  0x19   :  { %266 = dma.done.wait [#allocation6], 512  }
  0x1a   :  { %267 = vsyncadd [#allocation6], 4294966784  ;;  %v274_v0 = vmov 0   ;;  %v275_v1 = vmov 0.0   ;;  %v51_v2 = vld [vmem:[%s328_s2] sm:$0xff]  ;;  %v61_v4 = vld [vmem:[#allocation5 + $0x10] sm:$0xff] }
  0x1b   :  { %197 = vset.pattern.permute.xlu0 %v274_v0  ;;  %178 = vmatprep.subr.mxu0 %v275_v1  ;;  %v62_v3 = vld [vmem:[#allocation5 + $0x18] sm:$0xff]  ;;  %vm276_vm0 = vmmov 0   ;;  %v60_v5 = vld [vmem:[#allocation5 + $0x8] sm:$0xff]  ;;  %v59_v6 = vld [vmem:[#allocation5] sm:$0xff]  ;;  %vm70_vm1 = vcmask 261120  }
  0x1c   :  { %186 = vmatprep.mubr.msk.f32.mxu0 %vm276_vm0, %v275_v1  ;;  %54 = vperm.xlu0 %197, %v51_v2   ;;  %v47_v7 = vld [vmem:[#allocation2] sm:$0xff] }
  0x1d   :  { %179 = vmatpush3.msra.mxu0 %v62_v3  ;;  %v48_v8 = vmul.f32 1.442695, %v47_v7  ;;  %v50_v11 = vld [vmem:[%s326_s0] sm:$0xff]  ;;  %s277_s0 = smov [#allocation7]  }
  0x1e   :  { %180 = vmatprep.subr.mxu0 %v275_v1  ;;  %v171_v14 = vld [vmem:[%s330_s4] ss:$0 sm:$0xff]  ;;  %s161_s8 = sshll.u32 %s277_s0, 4  ;;  %s162_s8 = int_to_ptr.vmem [resolvable:$true] %s161_s8 }
  0x1f   :  { %181 = vmatpush3.msra.mxu0 %v61_v4  ;;  %198 = vpow2.f32 %v48_v8  ;;  %s244_s4 = scalar_lea.vmem %s162_s8, 128  ;;  %p249_p11 = scmp.lt.s32.totalorder %s162_s8, %s162_s8 }
  0x20   :  { %182 = vmatprep.subr.mxu0 %v275_v1  ;;  %p245_p10 = scmp.ne.s32.totalorder %s162_s8, %s244_s4  ;;  %p250_p12 = scmp.lt.s32.totalorder %s244_s4, %s244_s4 }
  0x21   :  { %183 = vmatpush3.msra.mxu0 %v60_v5 }
  0x22   :  { %184 = vmatprep.subr.mxu0 %v275_v1  ;;  %p251_p13 = por %p250_p12, %p249_p11 }
  0x23   :  { %185 = vmatpush3.msra.mxu0 %v59_v6 }
  0x24   :  { %p252_p0 = pnand %p251_p13, %p245_p10 }
  0x2c   :  { %v199_v9 = vpop.eup %198 }
  0x97   :  { %v55_v10 = vpop.permute.xlu0 %54 }
  0x98   :  { %v57_v12 = vmul.f32 %v199_v9, %v55_v10 }
  0x9a   :  { %v58_v13 = vadd.f32 %v57_v12, %v50_v11 }
  0x9c   :  { %187 = vmatmul.mubr.msk.f32.vlgmr.msra.gmra.mxu0 %vm70_vm1, %v58_v13 }
 0x15c   :  { %v140_v15 = vpop.f32.mrf.mxu0 }
 0x15d   :  { %v141_v16 = vadd.f32 %v171_v14, %v140_v15 }
 0x15e   :  { %v188_v17 = vpop.f32.mrf.mxu0 }
 0x15f   :  { %144 = vmax.xlane.f32.xlu0 %v141_v16 }
 0x1e8   :  { %v145_v18 = vpop.xlane.xlu0 %144 }
 0x1e9   :  { %v146_v19 = vsub.f32 %v141_v16, %v145_v18 }
 0x1eb   :  { %v147_v20 = vmul.f32 1.442695, %v146_v19 }
 0x1ed   :  { %200 = vpow2.f32 %v147_v20 }
 0x1fa   :  { %v201_v21 = vpop.eup %200 }
 0x1fb   :  { %149 = vadd.xlane.f32.xlu1 %v201_v21 }
 0x284   :  { %v150_v22 = vpop.xlane.xlu1 %149 }
 0x285   :  { %202 = vlog2.f32 %v150_v22 }
 0x292   :  { %v203_v23 = vpop.eup %202 }
 0x293   :  { %v152_v24 = vmul.f32 0.6931472, %v203_v23 }
 0x295   :  { %v153_v25 = vsub.f32 %v146_v19, %v152_v24 }
 0x297   :  { %154 = vst [vmem:[#allocation7] sm:$0xff] %v153_v25 }
 0x298   :  { %255 = shalt.err (!%p252_p0)
}
 0x299   :  { %164 = dma.vmem_to_hbm [thread:$0]  %s162_s8, 128, %s331_s5, [#allocation4]  }
 0x29a   :  { %268 = dma.done.wait [#allocation4], 128  }
 0x29b   :  { %269 = vsyncadd [#allocation4], 4294967168 }
 0x29c   :  { %168 = vsyncpa [#allocation3], 1 }
 0x29d   :  { %169 = vsyncpa [#allocation6], 1 }
 0x29e   :  { %170 = vsyncpa [#allocation4], 1 }

</bundles_post_ra>
